<compile_context>
chip_gen: v7x
topology: tpu7x:2x2x1
jax: 0.10.0
libtpu: 0.0.40
codegen_flags: <defaults>
</compile_context>

<pallas_src>
import functools

import jax
import jax.numpy as jnp
from jax.experimental import pallas as pl
from jax.experimental.pallas import tpu as pltpu

EPS = 1e-5


# ---------------------------------------------------------------------------
# Kernel helpers
# ---------------------------------------------------------------------------

def _linear(x_bf16, w_ref, b_ref):
    """bf16 MXU matmul with f32 accumulation; bias add in f32."""
    return jnp.dot(x_bf16, w_ref[...],
                   preferred_element_type=jnp.float32) + b_ref[...]


def _bn_relu(h2, g_ref, be_ref, tn, b):
    """Training-mode BatchNorm1d + ReLU, per-chunk stats, returns bf16.

    h2: (tn*b, F) f32 matmul output.  Stats are computed per chunk (axis=1 of
    the (tn, b, F) view) with a centered two-pass variance; the affine + ReLU
    run in f32 and the result is cast to bf16 for the next MXU matmul.
    """
    f = h2.shape[-1]
    h3 = h2.reshape(tn, b, f)
    mu = jnp.mean(h3, axis=1, keepdims=True)            # (tn, 1, f)
    xc = h3 - mu
    var = jnp.mean(xc * xc, axis=1, keepdims=True)      # biased var, two-pass
    scale = g_ref[...] * jax.lax.rsqrt(var + EPS)       # (tn, 1, f)
    y3 = jnp.maximum(xc * scale + be_ref[...], 0.0)
    return y3.reshape(tn * b, f).astype(jnp.bfloat16)


def qnetwork_kernel(action_size, tn, b,
                    x_ref,
                    w1_ref, b1_ref, g1_ref, be1_ref,
                    w2_ref, b2_ref, g2_ref, be2_ref,
                    w3_ref, b3_ref, g3_ref, be3_ref,
                    w4_ref, b4_ref, g4_ref, be4_ref,
                    wh_ref, bh_ref,
                    out_ref):
    """TN independent minibatches per grid step (BN batch = one chunk of B)."""
    m = tn * b
    x = x_ref[...].reshape(m, x_ref.shape[2]).astype(jnp.bfloat16)   # (M, S)

    h = _bn_relu(_linear(x, w1_ref, b1_ref), g1_ref, be1_ref, tn, b)
    h = _bn_relu(_linear(h, w2_ref, b2_ref), g2_ref, be2_ref, tn, b)
    h = _bn_relu(_linear(h, w3_ref, b3_ref), g3_ref, be3_ref, tn, b)
    h = _bn_relu(_linear(h, w4_ref, b4_ref), g4_ref, be4_ref, tn, b)

    # Fused, lane-padded head matmul: lanes [0, A) = advantage, lane A = value,
    # remaining lanes are zero weight / zero bias.
    y = _linear(h, wh_ref, bh_ref)                       # (M, PAD) f32
    pad = y.shape[-1]
    y3 = y.reshape(tn, b, pad)

    # Iota-mask arithmetic instead of sub-128 lane slices.
    lane = jax.lax.broadcasted_iota(jnp.int32, (tn, b, pad), 2)
    adv_mask = (lane < action_size).astype(jnp.float32)
    val_mask = (lane == action_size).astype(jnp.float32)

    # Per-chunk mean over ALL advantage elements (torch.mean with no dim).
    mean_af = jnp.sum(y3 * adv_mask, axis=(1, 2), keepdims=True) * (
        1.0 / (b * action_size))                         # (tn, 1, 1)
    value = jnp.sum(y3 * val_mask, axis=2, keepdims=True)  # (tn, b, 1)

    # Only lanes [0, A) are meaningful; padded lanes keep the store lane-dense.
    out_ref[...] = (value + (y3 - mean_af)).astype(out_ref.dtype)


# ---------------------------------------------------------------------------
# Parameter construction (mimics nn.Linear / nn.BatchNorm1d defaults).
# ---------------------------------------------------------------------------

def init_linear(key, fan_in, fan_out):
    kw, kb = jax.random.split(key)
    bound = 1.0 / jnp.sqrt(jnp.float32(fan_in))
    w = jax.random.uniform(kw, (fan_in, fan_out), jnp.float32, -bound, bound)
    b = jax.random.uniform(kb, (1, fan_out), jnp.float32, -bound, bound)
    return w, b


def init_bn(num_features):
    return (jnp.ones((1, num_features), jnp.float32),
            jnp.zeros((1, num_features), jnp.float32))


def make_params(state_size, action_size, seed=0):
    keys = jax.random.split(jax.random.PRNGKey(seed), 6)
    w1, b1 = init_linear(keys[0], state_size, 64)
    w2, b2 = init_linear(keys[1], 64, 128)
    w3, b3 = init_linear(keys[2], 128, 64)
    w4, b4 = init_linear(keys[3], 64, 32)
    wal, bal = init_linear(keys[4], 32, action_size)
    wv, bv = init_linear(keys[5], 32, 1)
    g1, be1 = init_bn(64)
    g2, be2 = init_bn(128)
    g3, be3 = init_bn(64)
    g4, be4 = init_bn(32)
    return (w1, b1, g1, be1,
            w2, b2, g2, be2,
            w3, b3, g3, be3,
            w4, b4, g4, be4,
            wal, bal, wv, bv)


def _prep_params(params, action_size, pad_width):
    """Fuse heads into one lane-padded matmul and cast weights to bf16."""
    (w1, b1, g1, be1,
     w2, b2, g2, be2,
     w3, b3, g3, be3,
     w4, b4, g4, be4,
     wal, bal, wv, bv) = params

    wh = jnp.zeros((wal.shape[0], pad_width), jnp.float32)
    wh = wh.at[:, :action_size].set(wal)
    wh = wh.at[:, action_size:action_size + 1].set(wv)
    bh = jnp.zeros((1, pad_width), jnp.float32)
    bh = bh.at[:, :action_size].set(bal)
    bh = bh.at[:, action_size:action_size + 1].set(bv)

    bf = lambda w: w.astype(jnp.bfloat16)
    return (bf(w1), b1, g1, be1,
            bf(w2), b2, g2, be2,
            bf(w3), b3, g3, be3,
            bf(w4), b4, g4, be4,
            bf(wh), bh)


# ---------------------------------------------------------------------------
# Wrappers
# ---------------------------------------------------------------------------

def _choose_tn(n, b, target_m):
    """Largest divisor of n with tn*b <= target_m, keeping grid extent >= 2
    when n allows (so v7x's two TensorCores both get work)."""
    cap = max(1, target_m // b)
    if n >= 2:
        cap = min(cap, max(1, n // 2))
    tn = 1
    for cand in range(1, min(cap, n) + 1):
        if n % cand == 0:
            tn = cand
    return tn


def qnetwork_forward_batched(x, params, target_m=256):
    """x: (N, B, S) -> (N, B, A) f32.  N independent forward passes in one
    call; BN stats / mean(af) stay per-chunk.  `target_m` ~ 256 fills the
    v6e/v7x MXU; use 128 on v5e."""
    N, B, S = x.shape
    action_size = params[16].shape[1]  # wal: (32, A)
    pad = max(128, pl.cdiv(action_size + 1, 128) * 128)
    kparams = _prep_params(params, action_size, pad)

    TN = _choose_tn(N, B, target_m)
    grid = (N // TN,)

    def weight_spec(p):
        # Full-array block, same block index every step -> VMEM-resident,
        # DMA'd exactly once across the whole grid.
        return pl.BlockSpec(p.shape, lambda i: (0, 0))

    out = pl.pallas_call(
        functools.partial(qnetwork_kernel, action_size, TN, B),
        out_shape=jax.ShapeDtypeStruct((N, B, pad), jnp.bfloat16),
        grid=grid,
        in_specs=[pl.BlockSpec((TN, B, S), lambda i: (i, 0, 0))]
        + [weight_spec(p) for p in kparams],
        out_specs=pl.BlockSpec((TN, B, pad), lambda i: (i, 0, 0)),
        compiler_params=pltpu.CompilerParams(
            dimension_semantics=("parallel",)),
    )(x, *kparams)
    # Only lanes [0, A) are meaningful; padded lanes contain value-derived
    # garbage and must be dropped here (or by a fused consumer).
    return out[:, :, :action_size].astype(jnp.float32)


def qnetwork_forward(x, params):
    """Single forward pass, exact module semantics: x (B, S) -> (B, A)."""
    return qnetwork_forward_batched(x[None], params)[0]


# ---------------------------------------------------------------------------
# Pure-JAX reference (same train-mode semantics; matmul dtype selectable so we
# can check both the PyTorch-f32 math and the kernel's bf16-MXU math).
# ---------------------------------------------------------------------------

def qnetwork_reference(x, params, matmul_dtype=jnp.float32):
    (w1, b1, g1, be1,
     w2, b2, g2, be2,
     w3, b3, g3, be3,
     w4, b4, g4, be4,
     wal, bal, wv, bv) = params

    def lin(h, w, b):
        return jnp.dot(h.astype(matmul_dtype), w.astype(matmul_dtype),
                       preferred_element_type=jnp.float32) + b

    def bn_relu(h, g, be):
        mu = jnp.mean(h, axis=0, keepdims=True)
        xc = h - mu
        var = jnp.mean(xc * xc, axis=0, keepdims=True)
        return jnp.maximum(xc * jax.lax.rsqrt(var + EPS) * g + be, 0.0)

    h = bn_relu(lin(x, w1, b1), g1, be1)
    h = bn_relu(lin(h, w2, b2), g2, be2)
    h = bn_relu(lin(h, w3, b3), g3, be3)
    h = bn_relu(lin(h, w4, b4), g4, be4)
    value = lin(h, wv, bv)
    af = lin(h, wal, bal)
    return value + (af - jnp.mean(af))


if __name__ == "__main__":
    B, S, A = 8, 8, 4
    key = jax.random.PRNGKey(0)
    kx, kxb = jax.random.split(key)
    params = make_params(S, A, seed=0)

    # --- single forward pass (one BN batch) -------------------------------
    x = jax.random.normal(kx, (B, S), jnp.float32)
    out = jax.block_until_ready(qnetwork_forward(x, params))
    assert out.shape == (B, A), out.shape

    ref_bf16 = qnetwork_reference(x, params, jnp.bfloat16)  # kernel math path
    ref_f32 = qnetwork_reference(x, params, jnp.float32)    # PyTorch f32 math
    assert jnp.allclose(out, ref_bf16, atol=2.5e-2, rtol=2.5e-2), \
        jnp.max(jnp.abs(out - ref_bf16))
    # Coarse check vs. f32 math (difference is only bf16 quantization).
    assert jnp.allclose(out, ref_f32, atol=1.5e-1, rtol=1.5e-1), \
        jnp.max(jnp.abs(out - ref_f32))

    # --- batched: 8 independent minibatches, chunk-packed grid ------------
    N = 8
    xb = jax.random.normal(kxb, (N, B, S), jnp.float32)
    outb = jax.block_until_ready(qnetwork_forward_batched(xb, params))
    assert outb.shape == (N, B, A), outb.shape
    refb = jnp.stack([qnetwork_reference(xb[i], params, jnp.bfloat16)
                      for i in range(N)])
    assert jnp.allclose(outb, refb, atol=2.5e-2, rtol=2.5e-2), \
        jnp.max(jnp.abs(outb - refb))

    print("KERNEL_OK")
</pallas_src>

<mosaic_0001>
module attributes {stable_mosaic.version = 11 : i64} {
  func.func @qnetwork_kernel(%arg0: i32, %arg1: memref<1x8x8xf32, #tpu.memory_space<vmem>>, %arg2: memref<8x64xbf16, #tpu.memory_space<vmem>>, %arg3: memref<1x64xf32, #tpu.memory_space<vmem>>, %arg4: memref<1x64xf32, #tpu.memory_space<vmem>>, %arg5: memref<1x64xf32, #tpu.memory_space<vmem>>, %arg6: memref<64x128xbf16, #tpu.memory_space<vmem>>, %arg7: memref<1x128xf32, #tpu.memory_space<vmem>>, %arg8: memref<1x128xf32, #tpu.memory_space<vmem>>, %arg9: memref<1x128xf32, #tpu.memory_space<vmem>>, %arg10: memref<128x64xbf16, #tpu.memory_space<vmem>>, %arg11: memref<1x64xf32, #tpu.memory_space<vmem>>, %arg12: memref<1x64xf32, #tpu.memory_space<vmem>>, %arg13: memref<1x64xf32, #tpu.memory_space<vmem>>, %arg14: memref<64x32xbf16, #tpu.memory_space<vmem>>, %arg15: memref<1x32xf32, #tpu.memory_space<vmem>>, %arg16: memref<1x32xf32, #tpu.memory_space<vmem>>, %arg17: memref<1x32xf32, #tpu.memory_space<vmem>>, %arg18: memref<32x128xbf16, #tpu.memory_space<vmem>>, %arg19: memref<1x128xf32, #tpu.memory_space<vmem>>, %arg20: memref<1x8x128xbf16, #tpu.memory_space<vmem>>) attributes {dimension_semantics = [#tpu.dimension_semantics<parallel>], iteration_bounds = array<i64: 1>, scalar_prefetch = 0 : i64, scratch_operands = 0 : i64, tpu.core_type = #tpu.core_type<tc>, window_params = [{transform_indices = @transform_0, window_bounds = array<i64: 1, 8, 8>}, {pipeline_mode = #tpu.pipeline_mode<synchronous>, transform_indices = @transform_1, window_bounds = array<i64: 8, 64>}, {pipeline_mode = #tpu.pipeline_mode<synchronous>, transform_indices = @transform_2, window_bounds = array<i64: 1, 64>}, {pipeline_mode = #tpu.pipeline_mode<synchronous>, transform_indices = @transform_3, window_bounds = array<i64: 1, 64>}, {pipeline_mode = #tpu.pipeline_mode<synchronous>, transform_indices = @transform_4, window_bounds = array<i64: 1, 64>}, {pipeline_mode = #tpu.pipeline_mode<synchronous>, transform_indices = @transform_5, window_bounds = array<i64: 64, 128>}, {pipeline_mode = #tpu.pipeline_mode<synchronous>, transform_indices = @transform_6, window_bounds = array<i64: 1, 128>}, {pipeline_mode = #tpu.pipeline_mode<synchronous>, transform_indices = @transform_7, window_bounds = array<i64: 1, 128>}, {pipeline_mode = #tpu.pipeline_mode<synchronous>, transform_indices = @transform_8, window_bounds = array<i64: 1, 128>}, {pipeline_mode = #tpu.pipeline_mode<synchronous>, transform_indices = @transform_9, window_bounds = array<i64: 128, 64>}, {pipeline_mode = #tpu.pipeline_mode<synchronous>, transform_indices = @transform_10, window_bounds = array<i64: 1, 64>}, {pipeline_mode = #tpu.pipeline_mode<synchronous>, transform_indices = @transform_11, window_bounds = array<i64: 1, 64>}, {pipeline_mode = #tpu.pipeline_mode<synchronous>, transform_indices = @transform_12, window_bounds = array<i64: 1, 64>}, {pipeline_mode = #tpu.pipeline_mode<synchronous>, transform_indices = @transform_13, window_bounds = array<i64: 64, 32>}, {pipeline_mode = #tpu.pipeline_mode<synchronous>, transform_indices = @transform_14, window_bounds = array<i64: 1, 32>}, {pipeline_mode = #tpu.pipeline_mode<synchronous>, transform_indices = @transform_15, window_bounds = array<i64: 1, 32>}, {pipeline_mode = #tpu.pipeline_mode<synchronous>, transform_indices = @transform_16, window_bounds = array<i64: 1, 32>}, {pipeline_mode = #tpu.pipeline_mode<synchronous>, transform_indices = @transform_17, window_bounds = array<i64: 32, 128>}, {pipeline_mode = #tpu.pipeline_mode<synchronous>, transform_indices = @transform_18, window_bounds = array<i64: 1, 128>}, {transform_indices = @transform_19, window_bounds = array<i64: 1, 8, 128>}]} {
    %c0 = arith.constant 0 : index
    %c0_0 = arith.constant 0 : index
    %c0_1 = arith.constant 0 : index
    %0 = vector.load %arg1[%c0, %c0_0, %c0_1] : memref<1x8x8xf32, #tpu.memory_space<vmem>>, vector<1x8x8xf32>
    %1 = vector.shape_cast %0 : vector<1x8x8xf32> to vector<8x8xf32>
    %2 = arith.truncf %1 : vector<8x8xf32> to vector<8x8xbf16>
    %c0_2 = arith.constant 0 : index
    %c0_3 = arith.constant 0 : index
    %3 = vector.load %arg2[%c0_2, %c0_3] : memref<8x64xbf16, #tpu.memory_space<vmem>>, vector<8x64xbf16>
    %cst = arith.constant dense<0.000000e+00> : vector<8x64xf32>
    %4 = tpu.matmul %2, %3, %cst {dimension_numbers = #tpu.dot_dimension_numbers<[1], [0], [0], [1], [0, 0, 1, 1], [], []>} : vector<8x8xbf16>, vector<8x64xbf16>, vector<8x64xf32> -> vector<8x64xf32>
    %c0_4 = arith.constant 0 : index
    %c0_5 = arith.constant 0 : index
    %5 = vector.load %arg3[%c0_4, %c0_5] : memref<1x64xf32, #tpu.memory_space<vmem>>, vector<1x64xf32>
    %6 = vector.broadcast %5 : vector<1x64xf32> to vector<8x64xf32>
    %7 = arith.addf %4, %6 : vector<8x64xf32>
    %8 = vector.shape_cast %7 : vector<8x64xf32> to vector<1x8x64xf32>
    %cst_6 = arith.constant dense<0.000000e+00> : vector<1x64xf32>
    %9 = vector.multi_reduction <add>, %8, %cst_6 [1] : vector<1x8x64xf32> to vector<1x64xf32>
    %10 = vector.shape_cast %9 : vector<1x64xf32> to vector<1x1x64xf32>
    %cst_7 = arith.constant 8.000000e+00 : f32
    %11 = vector.broadcast %cst_7 : f32 to vector<1x1x64xf32>
    %12 = arith.divf %10, %11 : vector<1x1x64xf32>
    %13 = vector.broadcast %12 : vector<1x1x64xf32> to vector<1x8x64xf32>
    %14 = arith.subf %8, %13 : vector<1x8x64xf32>
    %15 = arith.mulf %14, %14 : vector<1x8x64xf32>
    %cst_8 = arith.constant dense<0.000000e+00> : vector<1x64xf32>
    %16 = vector.multi_reduction <add>, %15, %cst_8 [1] : vector<1x8x64xf32> to vector<1x64xf32>
    %17 = vector.shape_cast %16 : vector<1x64xf32> to vector<1x1x64xf32>
    %cst_9 = arith.constant 8.000000e+00 : f32
    %18 = vector.broadcast %cst_9 : f32 to vector<1x1x64xf32>
    %19 = arith.divf %17, %18 : vector<1x1x64xf32>
    %c0_10 = arith.constant 0 : index
    %c0_11 = arith.constant 0 : index
    %20 = vector.load %arg4[%c0_10, %c0_11] : memref<1x64xf32, #tpu.memory_space<vmem>>, vector<1x64xf32>
    %cst_12 = arith.constant 9.99999974E-6 : f32
    %21 = vector.broadcast %cst_12 : f32 to vector<1x1x64xf32>
    %22 = arith.addf %19, %21 : vector<1x1x64xf32>
    %23 = math.rsqrt %22 : vector<1x1x64xf32>
    %24 = vector.shape_cast %20 : vector<1x64xf32> to vector<1x1x64xf32>
    %25 = arith.mulf %24, %23 : vector<1x1x64xf32>
    %26 = vector.broadcast %25 : vector<1x1x64xf32> to vector<1x8x64xf32>
    %27 = arith.mulf %14, %26 : vector<1x8x64xf32>
    %c0_13 = arith.constant 0 : index
    %c0_14 = arith.constant 0 : index
    %28 = vector.load %arg5[%c0_13, %c0_14] : memref<1x64xf32, #tpu.memory_space<vmem>>, vector<1x64xf32>
    %29 = vector.shape_cast %28 : vector<1x64xf32> to vector<1x1x64xf32>
    %30 = vector.broadcast %29 : vector<1x1x64xf32> to vector<1x8x64xf32>
    %31 = arith.addf %27, %30 : vector<1x8x64xf32>
    %cst_15 = arith.constant 0.000000e+00 : f32
    %32 = vector.broadcast %cst_15 : f32 to vector<1x8x64xf32>
    %33 = arith.maximumf %31, %32 : vector<1x8x64xf32>
    %34 = vector.shape_cast %33 : vector<1x8x64xf32> to vector<8x64xf32>
    %35 = arith.truncf %34 : vector<8x64xf32> to vector<8x64xbf16>
    %c0_16 = arith.constant 0 : index
    %c0_17 = arith.constant 0 : index
    %36 = vector.load %arg6[%c0_16, %c0_17] : memref<64x128xbf16, #tpu.memory_space<vmem>>, vector<64x128xbf16>
    %cst_18 = arith.constant dense<0.000000e+00> : vector<8x128xf32>
    %37 = tpu.matmul %35, %36, %cst_18 {dimension_numbers = #tpu.dot_dimension_numbers<[1], [0], [0], [1], [0, 0, 1, 1], [], []>} : vector<8x64xbf16>, vector<64x128xbf16>, vector<8x128xf32> -> vector<8x128xf32>
    %c0_19 = arith.constant 0 : index
    %c0_20 = arith.constant 0 : index
    %38 = vector.load %arg7[%c0_19, %c0_20] : memref<1x128xf32, #tpu.memory_space<vmem>>, vector<1x128xf32>
    %39 = vector.broadcast %38 : vector<1x128xf32> to vector<8x128xf32>
    %40 = arith.addf %37, %39 : vector<8x128xf32>
    %41 = vector.shape_cast %40 : vector<8x128xf32> to vector<1x8x128xf32>
    %cst_21 = arith.constant dense<0.000000e+00> : vector<1x128xf32>
    %42 = vector.multi_reduction <add>, %41, %cst_21 [1] : vector<1x8x128xf32> to vector<1x128xf32>
    %43 = vector.shape_cast %42 : vector<1x128xf32> to vector<1x1x128xf32>
    %cst_22 = arith.constant 8.000000e+00 : f32
    %44 = vector.broadcast %cst_22 : f32 to vector<1x1x128xf32>
    %45 = arith.divf %43, %44 : vector<1x1x128xf32>
    %46 = vector.broadcast %45 : vector<1x1x128xf32> to vector<1x8x128xf32>
    %47 = arith.subf %41, %46 : vector<1x8x128xf32>
    %48 = arith.mulf %47, %47 : vector<1x8x128xf32>
    %cst_23 = arith.constant dense<0.000000e+00> : vector<1x128xf32>
    %49 = vector.multi_reduction <add>, %48, %cst_23 [1] : vector<1x8x128xf32> to vector<1x128xf32>
    %50 = vector.shape_cast %49 : vector<1x128xf32> to vector<1x1x128xf32>
    %cst_24 = arith.constant 8.000000e+00 : f32
    %51 = vector.broadcast %cst_24 : f32 to vector<1x1x128xf32>
    %52 = arith.divf %50, %51 : vector<1x1x128xf32>
    %c0_25 = arith.constant 0 : index
    %c0_26 = arith.constant 0 : index
    %53 = vector.load %arg8[%c0_25, %c0_26] : memref<1x128xf32, #tpu.memory_space<vmem>>, vector<1x128xf32>
    %cst_27 = arith.constant 9.99999974E-6 : f32
    %54 = vector.broadcast %cst_27 : f32 to vector<1x1x128xf32>
    %55 = arith.addf %52, %54 : vector<1x1x128xf32>
    %56 = math.rsqrt %55 : vector<1x1x128xf32>
    %57 = vector.shape_cast %53 : vector<1x128xf32> to vector<1x1x128xf32>
    %58 = arith.mulf %57, %56 : vector<1x1x128xf32>
    %59 = vector.broadcast %58 : vector<1x1x128xf32> to vector<1x8x128xf32>
    %60 = arith.mulf %47, %59 : vector<1x8x128xf32>
    %c0_28 = arith.constant 0 : index
    %c0_29 = arith.constant 0 : index
    %61 = vector.load %arg9[%c0_28, %c0_29] : memref<1x128xf32, #tpu.memory_space<vmem>>, vector<1x128xf32>
    %62 = vector.shape_cast %61 : vector<1x128xf32> to vector<1x1x128xf32>
    %63 = vector.broadcast %62 : vector<1x1x128xf32> to vector<1x8x128xf32>
    %64 = arith.addf %60, %63 : vector<1x8x128xf32>
    %cst_30 = arith.constant 0.000000e+00 : f32
    %65 = vector.broadcast %cst_30 : f32 to vector<1x8x128xf32>
    %66 = arith.maximumf %64, %65 : vector<1x8x128xf32>
    %67 = vector.shape_cast %66 : vector<1x8x128xf32> to vector<8x128xf32>
    %68 = arith.truncf %67 : vector<8x128xf32> to vector<8x128xbf16>
    %c0_31 = arith.constant 0 : index
    %c0_32 = arith.constant 0 : index
    %69 = vector.load %arg10[%c0_31, %c0_32] : memref<128x64xbf16, #tpu.memory_space<vmem>>, vector<128x64xbf16>
    %cst_33 = arith.constant dense<0.000000e+00> : vector<8x64xf32>
    %70 = tpu.matmul %68, %69, %cst_33 {dimension_numbers = #tpu.dot_dimension_numbers<[1], [0], [0], [1], [0, 0, 1, 1], [], []>} : vector<8x128xbf16>, vector<128x64xbf16>, vector<8x64xf32> -> vector<8x64xf32>
    %c0_34 = arith.constant 0 : index
    %c0_35 = arith.constant 0 : index
    %71 = vector.load %arg11[%c0_34, %c0_35] : memref<1x64xf32, #tpu.memory_space<vmem>>, vector<1x64xf32>
    %72 = vector.broadcast %71 : vector<1x64xf32> to vector<8x64xf32>
    %73 = arith.addf %70, %72 : vector<8x64xf32>
    %74 = vector.shape_cast %73 : vector<8x64xf32> to vector<1x8x64xf32>
    %cst_36 = arith.constant dense<0.000000e+00> : vector<1x64xf32>
    %75 = vector.multi_reduction <add>, %74, %cst_36 [1] : vector<1x8x64xf32> to vector<1x64xf32>
    %76 = vector.shape_cast %75 : vector<1x64xf32> to vector<1x1x64xf32>
    %cst_37 = arith.constant 8.000000e+00 : f32
    %77 = vector.broadcast %cst_37 : f32 to vector<1x1x64xf32>
    %78 = arith.divf %76, %77 : vector<1x1x64xf32>
    %79 = vector.broadcast %78 : vector<1x1x64xf32> to vector<1x8x64xf32>
    %80 = arith.subf %74, %79 : vector<1x8x64xf32>
    %81 = arith.mulf %80, %80 : vector<1x8x64xf32>
    %cst_38 = arith.constant dense<0.000000e+00> : vector<1x64xf32>
    %82 = vector.multi_reduction <add>, %81, %cst_38 [1] : vector<1x8x64xf32> to vector<1x64xf32>
    %83 = vector.shape_cast %82 : vector<1x64xf32> to vector<1x1x64xf32>
    %cst_39 = arith.constant 8.000000e+00 : f32
    %84 = vector.broadcast %cst_39 : f32 to vector<1x1x64xf32>
    %85 = arith.divf %83, %84 : vector<1x1x64xf32>
    %c0_40 = arith.constant 0 : index
    %c0_41 = arith.constant 0 : index
    %86 = vector.load %arg12[%c0_40, %c0_41] : memref<1x64xf32, #tpu.memory_space<vmem>>, vector<1x64xf32>
    %cst_42 = arith.constant 9.99999974E-6 : f32
    %87 = vector.broadcast %cst_42 : f32 to vector<1x1x64xf32>
    %88 = arith.addf %85, %87 : vector<1x1x64xf32>
    %89 = math.rsqrt %88 : vector<1x1x64xf32>
    %90 = vector.shape_cast %86 : vector<1x64xf32> to vector<1x1x64xf32>
    %91 = arith.mulf %90, %89 : vector<1x1x64xf32>
    %92 = vector.broadcast %91 : vector<1x1x64xf32> to vector<1x8x64xf32>
    %93 = arith.mulf %80, %92 : vector<1x8x64xf32>
    %c0_43 = arith.constant 0 : index
    %c0_44 = arith.constant 0 : index
    %94 = vector.load %arg13[%c0_43, %c0_44] : memref<1x64xf32, #tpu.memory_space<vmem>>, vector<1x64xf32>
    %95 = vector.shape_cast %94 : vector<1x64xf32> to vector<1x1x64xf32>
    %96 = vector.broadcast %95 : vector<1x1x64xf32> to vector<1x8x64xf32>
    %97 = arith.addf %93, %96 : vector<1x8x64xf32>
    %cst_45 = arith.constant 0.000000e+00 : f32
    %98 = vector.broadcast %cst_45 : f32 to vector<1x8x64xf32>
    %99 = arith.maximumf %97, %98 : vector<1x8x64xf32>
    %100 = vector.shape_cast %99 : vector<1x8x64xf32> to vector<8x64xf32>
    %101 = arith.truncf %100 : vector<8x64xf32> to vector<8x64xbf16>
    %c0_46 = arith.constant 0 : index
    %c0_47 = arith.constant 0 : index
    %102 = vector.load %arg14[%c0_46, %c0_47] : memref<64x32xbf16, #tpu.memory_space<vmem>>, vector<64x32xbf16>
    %cst_48 = arith.constant dense<0.000000e+00> : vector<8x32xf32>
    %103 = tpu.matmul %101, %102, %cst_48 {dimension_numbers = #tpu.dot_dimension_numbers<[1], [0], [0], [1], [0, 0, 1, 1], [], []>} : vector<8x64xbf16>, vector<64x32xbf16>, vector<8x32xf32> -> vector<8x32xf32>
    %c0_49 = arith.constant 0 : index
    %c0_50 = arith.constant 0 : index
    %104 = vector.load %arg15[%c0_49, %c0_50] : memref<1x32xf32, #tpu.memory_space<vmem>>, vector<1x32xf32>
    %105 = vector.broadcast %104 : vector<1x32xf32> to vector<8x32xf32>
    %106 = arith.addf %103, %105 : vector<8x32xf32>
    %107 = vector.shape_cast %106 : vector<8x32xf32> to vector<1x8x32xf32>
    %cst_51 = arith.constant dense<0.000000e+00> : vector<1x32xf32>
    %108 = vector.multi_reduction <add>, %107, %cst_51 [1] : vector<1x8x32xf32> to vector<1x32xf32>
    %109 = vector.shape_cast %108 : vector<1x32xf32> to vector<1x1x32xf32>
    %cst_52 = arith.constant 8.000000e+00 : f32
    %110 = vector.broadcast %cst_52 : f32 to vector<1x1x32xf32>
    %111 = arith.divf %109, %110 : vector<1x1x32xf32>
    %112 = vector.broadcast %111 : vector<1x1x32xf32> to vector<1x8x32xf32>
    %113 = arith.subf %107, %112 : vector<1x8x32xf32>
    %114 = arith.mulf %113, %113 : vector<1x8x32xf32>
    %cst_53 = arith.constant dense<0.000000e+00> : vector<1x32xf32>
    %115 = vector.multi_reduction <add>, %114, %cst_53 [1] : vector<1x8x32xf32> to vector<1x32xf32>
    %116 = vector.shape_cast %115 : vector<1x32xf32> to vector<1x1x32xf32>
    %cst_54 = arith.constant 8.000000e+00 : f32
    %117 = vector.broadcast %cst_54 : f32 to vector<1x1x32xf32>
    %118 = arith.divf %116, %117 : vector<1x1x32xf32>
    %c0_55 = arith.constant 0 : index
    %c0_56 = arith.constant 0 : index
    %119 = vector.load %arg16[%c0_55, %c0_56] : memref<1x32xf32, #tpu.memory_space<vmem>>, vector<1x32xf32>
    %cst_57 = arith.constant 9.99999974E-6 : f32
    %120 = vector.broadcast %cst_57 : f32 to vector<1x1x32xf32>
    %121 = arith.addf %118, %120 : vector<1x1x32xf32>
    %122 = math.rsqrt %121 : vector<1x1x32xf32>
    %123 = vector.shape_cast %119 : vector<1x32xf32> to vector<1x1x32xf32>
    %124 = arith.mulf %123, %122 : vector<1x1x32xf32>
    %125 = vector.broadcast %124 : vector<1x1x32xf32> to vector<1x8x32xf32>
    %126 = arith.mulf %113, %125 : vector<1x8x32xf32>
    %c0_58 = arith.constant 0 : index
    %c0_59 = arith.constant 0 : index
    %127 = vector.load %arg17[%c0_58, %c0_59] : memref<1x32xf32, #tpu.memory_space<vmem>>, vector<1x32xf32>
    %128 = vector.shape_cast %127 : vector<1x32xf32> to vector<1x1x32xf32>
    %129 = vector.broadcast %128 : vector<1x1x32xf32> to vector<1x8x32xf32>
    %130 = arith.addf %126, %129 : vector<1x8x32xf32>
    %cst_60 = arith.constant 0.000000e+00 : f32
    %131 = vector.broadcast %cst_60 : f32 to vector<1x8x32xf32>
    %132 = arith.maximumf %130, %131 : vector<1x8x32xf32>
    %133 = vector.shape_cast %132 : vector<1x8x32xf32> to vector<8x32xf32>
    %134 = arith.truncf %133 : vector<8x32xf32> to vector<8x32xbf16>
    %c0_61 = arith.constant 0 : index
    %c0_62 = arith.constant 0 : index
    %135 = vector.load %arg18[%c0_61, %c0_62] : memref<32x128xbf16, #tpu.memory_space<vmem>>, vector<32x128xbf16>
    %cst_63 = arith.constant dense<0.000000e+00> : vector<8x128xf32>
    %136 = tpu.matmul %134, %135, %cst_63 {dimension_numbers = #tpu.dot_dimension_numbers<[1], [0], [0], [1], [0, 0, 1, 1], [], []>} : vector<8x32xbf16>, vector<32x128xbf16>, vector<8x128xf32> -> vector<8x128xf32>
    %c0_64 = arith.constant 0 : index
    %c0_65 = arith.constant 0 : index
    %137 = vector.load %arg19[%c0_64, %c0_65] : memref<1x128xf32, #tpu.memory_space<vmem>>, vector<1x128xf32>
    %138 = vector.broadcast %137 : vector<1x128xf32> to vector<8x128xf32>
    %139 = arith.addf %136, %138 : vector<8x128xf32>
    %140 = vector.shape_cast %139 : vector<8x128xf32> to vector<1x8x128xf32>
    %141 = tpu.iota {dimensions = array<i32: 2>} : vector<1x8x128xi32>
    %c4_i32 = arith.constant 4 : i32
    %142 = vector.broadcast %c4_i32 : i32 to vector<1x8x128xi32>
    %143 = arith.cmpi slt, %141, %142 : vector<1x8x128xi32>
    %144 = arith.extui %143 : vector<1x8x128xi1> to vector<1x8x128xi32>
    %145 = arith.sitofp %144 : vector<1x8x128xi32> to vector<1x8x128xf32>
    %c4_i32_66 = arith.constant 4 : i32
    %146 = vector.broadcast %c4_i32_66 : i32 to vector<1x8x128xi32>
    %147 = arith.cmpi eq, %141, %146 : vector<1x8x128xi32>
    %148 = arith.extui %147 : vector<1x8x128xi1> to vector<1x8x128xi32>
    %149 = arith.sitofp %148 : vector<1x8x128xi32> to vector<1x8x128xf32>
    %150 = arith.mulf %140, %145 : vector<1x8x128xf32>
    %cst_67 = arith.constant dense<0.000000e+00> : vector<1xf32>
    %151 = vector.multi_reduction <add>, %150, %cst_67 [1, 2] : vector<1x8x128xf32> to vector<1xf32>
    %152 = vector.shape_cast %151 : vector<1xf32> to vector<1x1x1xf32>
    %cst_68 = arith.constant 3.125000e-02 : f32
    %153 = vector.broadcast %cst_68 : f32 to vector<1x1x1xf32>
    %154 = arith.mulf %152, %153 : vector<1x1x1xf32>
    %155 = arith.mulf %140, %149 : vector<1x8x128xf32>
    %cst_69 = arith.constant dense<0.000000e+00> : vector<1x8xf32>
    %156 = vector.multi_reduction <add>, %155, %cst_69 [2] : vector<1x8x128xf32> to vector<1x8xf32>
    %157 = vector.shape_cast %156 : vector<1x8xf32> to vector<1x8x1xf32>
    %158 = vector.broadcast %154 : vector<1x1x1xf32> to vector<1x8x128xf32>
    %159 = arith.subf %140, %158 : vector<1x8x128xf32>
    %160 = vector.broadcast %157 : vector<1x8x1xf32> to vector<1x8x128xf32>
    %161 = arith.addf %160, %159 : vector<1x8x128xf32>
    %162 = arith.truncf %161 : vector<1x8x128xf32> to vector<1x8x128xbf16>
    %c0_70 = arith.constant 0 : index
    %c0_71 = arith.constant 0 : index
    %c0_72 = arith.constant 0 : index
    %163 = vector.load %arg20[%c0_70, %c0_71, %c0_72] : memref<1x8x128xbf16, #tpu.memory_space<vmem>>, vector<1x8x128xbf16>
    tpu.vector_store %arg20[%c0_70, %c0_71, %c0_72], %162 {strides = array<i32>} : memref<1x8x128xbf16, #tpu.memory_space<vmem>>, vector<1x8x128xbf16>,
    return
  }
  func.func @transform_0(%arg0: i32) -> (i32, i32, i32) {
    %c0_i32 = arith.constant 0 : i32
    %c0_i32_0 = arith.constant 0 : i32
    %c0_i32_1 = arith.constant 0 : i32
    return %arg0, %c0_i32, %c0_i32_0 : i32, i32, i32
  }
  func.func @transform_1(%arg0: i32) -> (i32, i32) {
    %c0_i32 = arith.constant 0 : i32
    %c0_i32_0 = arith.constant 0 : i32
    %c0_i32_1 = arith.constant 0 : i32
    return %c0_i32, %c0_i32_0 : i32, i32
  }
  func.func @transform_2(%arg0: i32) -> (i32, i32) {
    %c0_i32 = arith.constant 0 : i32
    %c0_i32_0 = arith.constant 0 : i32
    %c0_i32_1 = arith.constant 0 : i32
    return %c0_i32, %c0_i32_0 : i32, i32
  }
  func.func @transform_3(%arg0: i32) -> (i32, i32) {
    %c0_i32 = arith.constant 0 : i32
    %c0_i32_0 = arith.constant 0 : i32
    %c0_i32_1 = arith.constant 0 : i32
    return %c0_i32, %c0_i32_0 : i32, i32
  }
  func.func @transform_4(%arg0: i32) -> (i32, i32) {
    %c0_i32 = arith.constant 0 : i32
    %c0_i32_0 = arith.constant 0 : i32
    %c0_i32_1 = arith.constant 0 : i32
    return %c0_i32, %c0_i32_0 : i32, i32
  }
  func.func @transform_5(%arg0: i32) -> (i32, i32) {
    %c0_i32 = arith.constant 0 : i32
    %c0_i32_0 = arith.constant 0 : i32
    %c0_i32_1 = arith.constant 0 : i32
    return %c0_i32, %c0_i32_0 : i32, i32
  }
  func.func @transform_6(%arg0: i32) -> (i32, i32) {
    %c0_i32 = arith.constant 0 : i32
    %c0_i32_0 = arith.constant 0 : i32
    %c0_i32_1 = arith.constant 0 : i32
    return %c0_i32, %c0_i32_0 : i32, i32
  }
  func.func @transform_7(%arg0: i32) -> (i32, i32) {
    %c0_i32 = arith.constant 0 : i32
    %c0_i32_0 = arith.constant 0 : i32
    %c0_i32_1 = arith.constant 0 : i32
    return %c0_i32, %c0_i32_0 : i32, i32
  }
  func.func @transform_8(%arg0: i32) -> (i32, i32) {
    %c0_i32 = arith.constant 0 : i32
    %c0_i32_0 = arith.constant 0 : i32
    %c0_i32_1 = arith.constant 0 : i32
    return %c0_i32, %c0_i32_0 : i32, i32
  }
  func.func @transform_9(%arg0: i32) -> (i32, i32) {
    %c0_i32 = arith.constant 0 : i32
    %c0_i32_0 = arith.constant 0 : i32
    %c0_i32_1 = arith.constant 0 : i32
    return %c0_i32, %c0_i32_0 : i32, i32
  }
  func.func @transform_10(%arg0: i32) -> (i32, i32) {
    %c0_i32 = arith.constant 0 : i32
    %c0_i32_0 = arith.constant 0 : i32
    %c0_i32_1 = arith.constant 0 : i32
    return %c0_i32, %c0_i32_0 : i32, i32
  }
  func.func @transform_11(%arg0: i32) -> (i32, i32) {
    %c0_i32 = arith.constant 0 : i32
    %c0_i32_0 = arith.constant 0 : i32
    %c0_i32_1 = arith.constant 0 : i32
    return %c0_i32, %c0_i32_0 : i32, i32
  }
  func.func @transform_12(%arg0: i32) -> (i32, i32) {
    %c0_i32 = arith.constant 0 : i32
    %c0_i32_0 = arith.constant 0 : i32
    %c0_i32_1 = arith.constant 0 : i32
    return %c0_i32, %c0_i32_0 : i32, i32
  }
  func.func @transform_13(%arg0: i32) -> (i32, i32) {
    %c0_i32 = arith.constant 0 : i32
    %c0_i32_0 = arith.constant 0 : i32
    %c0_i32_1 = arith.constant 0 : i32
    return %c0_i32, %c0_i32_0 : i32, i32
  }
  func.func @transform_14(%arg0: i32) -> (i32, i32) {
    %c0_i32 = arith.constant 0 : i32
    %c0_i32_0 = arith.constant 0 : i32
    %c0_i32_1 = arith.constant 0 : i32
    return %c0_i32, %c0_i32_0 : i32, i32
  }
  func.func @transform_15(%arg0: i32) -> (i32, i32) {
    %c0_i32 = arith.constant 0 : i32
    %c0_i32_0 = arith.constant 0 : i32
    %c0_i32_1 = arith.constant 0 : i32
    return %c0_i32, %c0_i32_0 : i32, i32
  }
  func.func @transform_16(%arg0: i32) -> (i32, i32) {
    %c0_i32 = arith.constant 0 : i32
    %c0_i32_0 = arith.constant 0 : i32
    %c0_i32_1 = arith.constant 0 : i32
    return %c0_i32, %c0_i32_0 : i32, i32
  }
  func.func @transform_17(%arg0: i32) -> (i32, i32) {
    %c0_i32 = arith.constant 0 : i32
    %c0_i32_0 = arith.constant 0 : i32
    %c0_i32_1 = arith.constant 0 : i32
    return %c0_i32, %c0_i32_0 : i32, i32
  }
  func.func @transform_18(%arg0: i32) -> (i32, i32) {
    %c0_i32 = arith.constant 0 : i32
    %c0_i32_0 = arith.constant 0 : i32
    %c0_i32_1 = arith.constant 0 : i32
    return %c0_i32, %c0_i32_0 : i32, i32
  }
  func.func @transform_19(%arg0: i32) -> (i32, i32, i32) {
    %c0_i32 = arith.constant 0 : i32
    %c0_i32_0 = arith.constant 0 : i32
    %c0_i32_1 = arith.constant 0 : i32
    return %arg0, %c0_i32, %c0_i32_0 : i32, i32, i32
  }
}

</mosaic_0001>

<bundles_post_ra>
// kernel: tpu_custom_call.1
= control target key start
LH: loop header
LB: loop body
LE: loop exit
PB: predicated region body
PF: predicated region fallthrough
CT: control target
= control target key end

     0   :  { %s1089_s0 = inlined_call_operand.vmem [shape: f32[1,8,8], index: 0, kind: input, shape index: {}]   ;;  %s1090_s1 = inlined_call_operand.vmem [shape: bf16[8,64], index: 1, kind: input, shape index: {}]   ;;  %s1091_s2 = inlined_call_operand.vmem [shape: f32[1,64], index: 2, kind: input, shape index: {}]   ;;  %s1092_s3 = inlined_call_operand.vmem [shape: f32[1,64], index: 3, kind: input, shape index: {}]   ;;  %s1093_s4 = inlined_call_operand.vmem [shape: f32[1,64], index: 4, kind: input, shape index: {}]   ;;  %s1094_s5 = inlined_call_operand.vmem [shape: bf16[64,128], index: 5, kind: input, shape index: {}]   ;;  %s1095_s6 = inlined_call_operand.vmem [shape: f32[1,128], index: 6, kind: input, shape index: {}]   ;;  %s1096_s7 = inlined_call_operand.vmem [shape: f32[1,128], index: 7, kind: input, shape index: {}]   ;;  %s1097_s8 = inlined_call_operand.vmem [shape: f32[1,128], index: 8, kind: input, shape index: {}]   ;;  %s1098_s9 = inlined_call_operand.vmem [shape: bf16[128,64], index: 9, kind: input, shape index: {}]   ;;  %s1099_s10 = inlined_call_operand.vmem [shape: f32[1,64], index: 10, kind: input, shape index: {}]   ;;  %s1100_s11 = inlined_call_operand.vmem [shape: f32[1,64], index: 11, kind: input, shape index: {}]   ;;  %s1101_s12 = inlined_call_operand.vmem [shape: f32[1,64], index: 12, kind: input, shape index: {}]   ;;  %s1102_s13 = inlined_call_operand.vmem [shape: bf16[64,32], index: 13, kind: input, shape index: {}]   ;;  %s1103_s14 = inlined_call_operand.vmem [shape: f32[1,32], index: 14, kind: input, shape index: {}]   ;;  %s1104_s15 = inlined_call_operand.vmem [shape: f32[1,32], index: 15, kind: input, shape index: {}]   ;;  %s1105_s16 = inlined_call_operand.vmem [shape: f32[1,32], index: 16, kind: input, shape index: {}]   ;;  %s1106_s17 = inlined_call_operand.vmem [shape: bf16[32,128], index: 17, kind: input, shape index: {}]   ;;  %s1107_s18 = inlined_call_operand.vmem [shape: f32[1,128], index: 18, kind: input, shape index: {}]   ;;  %s1108_s19 = inlined_call_operand.hbm [shape: bf16[1,8,128], index: 19, kind: output, shape index: {}]  }
   0x1   :  { %1109 = sst [smem:[#allocation5_spill]] %s1089_s0 }
   0x2   :  { %1110 = sst [smem:[#allocation6_spill]] %s1090_s1 }
   0x3   :  { %1111 = sst [smem:[#allocation7_spill]] %s1091_s2 }
   0x4   :  { %1112 = sst [smem:[#allocation8_spill]] %s1092_s3 }
   0x5   :  { %s1113_s20 = sld [smem:[#allocation6_spill]]  ;;  %vm78_vm0 = vcmask 1043456   ;;  %s1114_s22 = sld [smem:[#allocation5_spill]]  ;;  %v827_v2 = vmov 0.0   ;;  %vm828_vm1 = vmmov 0   ;;  %vm74_vm2 = vcmask 64512  }
   0x6   :  { %716 = vmatprep.subr.bf16.mxu0 %v827_v2  ;;  %718 = vmatprep.mubr.msk.bf16.mxu0 %vm828_vm1, %v827_v2 }
   0x7   :  { %722 = vmatprep.subr.bf16.mxu1 %v827_v2  ;;  %730 = vmatprep.mubr.msk.bf16.mxu1 %vm828_vm1, %v827_v2 }
   0xb   :  { %v66_v0 = vld [vmem:[%s1113_s20] sm:$0xf] }
   0xc   :  { %v64_v1 = vld [vmem:[%s1114_s22] sm:$0xff]  ;;  %v80_v3 = vsel %vm78_vm0, %v66_v0, 0 }
   0xd   :  { %v65_v4 = vpack.c.bf16 %v64_v1, %v64_v1  ;;  %717 = vmatpush3.bf16.msra.mxu0 %v80_v3 }
   0xe   :  { %734 = vmatprep.subr.bf16.mxu0 %v827_v2 }
  0x10   :  { %719 = vmatmul.mubr.msk.bf16.vlgmr.msra.gmra.mrb[0].mxu0 %vm74_vm2, %v65_v4 }
  0x11   :  { %750 = vmatprep.mubr.msk.bf16.mxu0 %vm828_vm1, %v827_v2 }
  0x12   :  { %24 = vsyncpa [#allocation3], 0  ;;  %v777_v5 = vld [vmem:[%s1094_s5] sm:$0xff]   ;;  %v778_v6 = vld [vmem:[%s1094_s5 + $0x8] sm:$0xff]   ;;  %s1115_s30 = sld [smem:[#allocation7_spill]]  ;;  %vm122_vm3 = vcmask 523264   ;;  %v147_v34 = vlaneseq }
  0x13   :  { %723 = vmatpush3.bf16.msra.mxu1 %v777_v5  ;;  %v779_v7 = vld [vmem:[%s1094_s5 + $0x10] sm:$0xff]   ;;  %v780_v8 = vld [vmem:[%s1094_s5 + $0x18] sm:$0xff]   ;;  %s1116_s21 = sld [smem:[#allocation8_spill]]  ;;  %v661_v41 = vld [vmem:[%s1093_s4] ss:$0 sm:$0xff]  ;;  %vm514_vm4 = vcmask 261120  }
  0x14   :  { %724 = vmatprep.subr.bf16.mxu1 %v827_v2  ;;  %v148_v35 = vshrl.u32 %v147_v34, 7  ;;  %v781_v46 = vld [vmem:[%s1098_s9] sm:$0xff]   ;;  %v782_v47 = vld [vmem:[%s1098_s9 + $0x8] sm:$0xff]   ;;  %v783_v48 = vld [vmem:[%s1098_s9 + $0x10] sm:$0xff]  }
  0x15   :  { %735 = vmatpush3.bf16.msra.mxu0 %v781_v46  ;;  %v784_v49 = vld [vmem:[%s1098_s9 + $0x18] sm:$0xff]   ;;  %v785_v50 = vld [vmem:[%s1098_s9 + $0x20] sm:$0xff]   ;;  %v786_v51 = vld [vmem:[%s1098_s9 + $0x28] sm:$0xff]  }
  0x16   :  { %v970_v37 = vsub.s32 0, %v148_v35  ;;  %736 = vmatprep.subr.bf16.mxu0 %v827_v2  ;;  %v787_v52 = vld [vmem:[%s1098_s9 + $0x30] sm:$0xff]   ;;  %v788_v53 = vld [vmem:[%s1098_s9 + $0x38] sm:$0xff]   ;;  %v662_v54 = vld [vmem:[%s1095_s6] ss:$0 sm:$0xff] }
  0x17   :  { %725 = vmatpush3.bf16.msra.mxu1 %v778_v6 }
  0x18   :  { %726 = vmatprep.subr.bf16.mxu1 %v827_v2  ;;  %v659_v9 = vld [vmem:[%s1115_s30] ss:$0 sm:$0xff] }
  0x19   :  { %v142_v36 = vld [vmem:[%s1116_s21] sm:$0x1]  ;;  %737 = vmatpush3.bf16.msra.mxu0 %v782_v47 }
  0x1a   :  { %738 = vmatprep.subr.bf16.mxu0 %v827_v2 }
  0x1b   :  { %727 = vmatpush3.bf16.msra.mxu1 %v779_v7 }
  0x1c   :  { %728 = vmatprep.subr.bf16.mxu1 %v827_v2 }
  0x1d   :  { %739 = vmatpush3.bf16.msra.mxu0 %v783_v48 }
  0x1e   :  { %740 = vmatprep.subr.bf16.mxu0 %v827_v2 }
  0x1f   :  { %729 = vmatpush3.bf16.msra.mxu1 %v780_v8 }
  0x20   :  { %754 = vmatprep.subr.bf16.mxu1 %v827_v2 }
  0x21   :  { %741 = vmatpush3.bf16.msra.mxu0 %v784_v49 }
  0x22   :  { %742 = vmatprep.subr.bf16.mxu0 %v827_v2 }
  0x25   :  { %743 = vmatpush3.bf16.msra.mxu0 %v785_v50 }
  0x26   :  { %744 = vmatprep.subr.bf16.mxu0 %v827_v2 }
  0x29   :  { %745 = vmatpush3.bf16.msra.mxu0 %v786_v51 }
  0x2a   :  { %746 = vmatprep.subr.bf16.mxu0 %v827_v2 }
  0x2d   :  { %747 = vmatpush3.bf16.msra.mxu0 %v787_v52 }
  0x2e   :  { %748 = vmatprep.subr.bf16.mxu0 %v827_v2 }
  0x31   :  { %749 = vmatpush3.bf16.msra.mxu0 %v788_v53 }
  0xe3   :  { %v116_v10 = vpop.f32.mrb[0].mxu0 }
  0xe4   :  { %v117_v11 = vadd.f32 %v659_v9, %v116_v10  ;;  %v720_v12 = vpop.f32.mrb[1].mxu0 }
  0xe5   :  { %v119_v13 = vpop.f32.mrb[2].mxu0 }
  0xe6   :  { %v123_v14 = vsel %vm122_vm3, %v117_v11, 0.0  ;;  %v721_v15 = vpop.f32.mrb[3].mxu0 }
  0xe7   :  { %v124_v16 = vrot.slane %v123_v14, 4 }
  0xe9   :  { %v125_v17 = vadd.f32 %v124_v16, %v123_v14  ;;  %v261_v14 = vld [vmem:[%s1096_s7] sm:$0x1] }
  0xeb   :  { %v126_v18 = vrot.slane %v125_v17, 2 }
  0xed   :  { %v127_v19 = vadd.f32 %v126_v18, %v125_v17  ;;  %v668_v18 = vld [vmem:[%s1097_s8] ss:$0 sm:$0xff] }
  0xef   :  { %v128_v20 = vrot.slane %v127_v19, 1 }
  0xf1   :  { %v129_v21 = vadd.f32 %v128_v20, %v127_v19 }
  0xf3   :  { %v131_v22 = vmul.f32 0.125, %v129_v21 }
  0xf5   :  { %v132_v23 = vsub.f32 %v117_v11, %v131_v22 }
  0xf7   :  { %v133_v24 = vmul.f32 %v132_v23, %v132_v23 }
  0xf9   :  { %v134_v25 = vsel %vm122_vm3, %v133_v24, 0.0  ;;  %v790_v24 = vld [vmem:[%s1102_s13 + $0x8] sm:$0xff]  }
  0xfa   :  { %v135_v26 = vrot.slane %v134_v25, 4 }
  0xfc   :  { %v136_v27 = vadd.f32 %v135_v26, %v134_v25  ;;  %v791_v25 = vld [vmem:[%s1102_s13 + $0x10] sm:$0xff]   ;;  %v792_v26 = vld [vmem:[%s1102_s13 + $0x18] sm:$0xff]  }
  0xfe   :  { %v137_v28 = vrot.slane %v136_v27, 2 }
 0x100   :  { %v138_v29 = vadd.f32 %v137_v28, %v136_v27  ;;  %v669_v27 = vld [vmem:[%s1099_s10] ss:$0 sm:$0xff] }
 0x102   :  { %v139_v30 = vrot.slane %v138_v29, 1 }
 0x104   :  { %v140_v31 = vadd.f32 %v139_v30, %v138_v29 }
 0x106   :  { %v141_v32 = vmul.f32 0.125, %v140_v31 }
 0x108   :  { %v143_v33 = vadd.f32 1e-05, %v141_v32 }
 0x10a   :  { %795 = vrsqrt.f32 %v143_v33 }
 0x114   :  { %v796_v38 = vpop.eup %795 }
 0x115   :  { %v145_v39 = vmul.f32 %v796_v38, %v142_v36 }
 0x117   :  { %v150_v40 = vrot.slane %v145_v39, %v970_v37 }
 0x119   :  { %v152_v42 = vmul.f32 %v150_v40, %v132_v23  ;;  %v789_v23 = vld [vmem:[%s1102_s13] sm:$0xff]  }
 0x11b   :  { %v160_v43 = vadd.f32 %v661_v41, %v152_v42 }
 0x11d   :  { %v161_v44 = vmax.f32 %v160_v43, 0.0 }
 0x11f   :  { %v162_v45 = vpack.c.bf16 %v161_v44, %v161_v44 }
 0x121   :  { %731 = vmatmul.mubr.msk.bf16.vlgmr.msra.gmra.mrb[0].mxu1 %vm122_vm3, %v162_v45 }
 0x122   :  { %762 = vmatprep.mubr.msk.bf16.mxu1 %vm828_vm1, %v827_v2  ;;  %755 = vmatpush3.bf16.msra.mxu1 %v789_v23 }
 0x123   :  { %756 = vmatprep.subr.bf16.mxu1 %v827_v2 }
 0x126   :  { %757 = vmatpush3.bf16.msra.mxu1 %v790_v24 }
 0x127   :  { %758 = vmatprep.subr.bf16.mxu1 %v827_v2 }
 0x12a   :  { %759 = vmatpush3.bf16.msra.mxu1 %v791_v25 }
 0x12b   :  { %760 = vmatprep.subr.bf16.mxu1 %v827_v2 }
 0x12e   :  { %761 = vmatpush3.bf16.msra.mxu1 %v792_v26 }
 0x12f   :  { %766 = vmatprep.subr.bf16.mxu1 %v827_v2 }
 0x1f4   :  { %v239_v55 = vpop.f32.mrb[0].mxu1 }
 0x1f5   :  { %v240_v56 = vadd.f32 %v662_v54, %v239_v55  ;;  %v732_v57 = vpop.f32.mrb[1].mxu1  ;;  %v411_v54 = vld [vmem:[%s1100_s11] sm:$0x1] }
 0x1f6   :  { %v242_v58 = vpop.f32.mrb[2].mxu1 }
 0x1f7   :  { %v245_v59 = vrot.slane %v240_v56, 4  ;;  %v733_v60 = vpop.f32.mrb[3].mxu1  ;;  %v678_v58 = vld [vmem:[%s1101_s12] ss:$0 sm:$0xff] }
 0x1f9   :  { %v246_v61 = vadd.f32 %v245_v59, %v240_v56 }
 0x1fb   :  { %v247_v62 = vrot.slane %v246_v61, 2 }
 0x1fd   :  { %v248_v63 = vadd.f32 %v247_v62, %v246_v61 }
 0x1ff   :  { %v249_v0 = vrot.slane %v248_v63, 1 }
 0x201   :  { %v250_v1 = vadd.f32 %v249_v0, %v248_v63  ;;  %v793_v63 = vld [vmem:[%s1106_s17] sm:$0xff]   ;;  %v794_v0 = vld [vmem:[%s1106_s17 + $0x8] sm:$0xff]  }
 0x203   :  { %v251_v3 = vmul.f32 0.125, %v250_v1  ;;  %v679_v1 = vld [vmem:[%s1103_s14] ss:$0 sm:$0xff] }
 0x205   :  { %v252_v4 = vsub.f32 %v240_v56, %v251_v3 }
 0x207   :  { %v253_v5 = vmul.f32 %v252_v4, %v252_v4 }
 0x209   :  { %v254_v6 = vrot.slane %v253_v5, 4 }
 0x20b   :  { %v255_v7 = vadd.f32 %v254_v6, %v253_v5 }
 0x20d   :  { %v256_v8 = vrot.slane %v255_v7, 2 }
 0x20f   :  { %v257_v9 = vadd.f32 %v256_v8, %v255_v7 }
 0x211   :  { %v258_v10 = vrot.slane %v257_v9, 1 }
 0x213   :  { %v259_v11 = vadd.f32 %v258_v10, %v257_v9 }
 0x215   :  { %v260_v12 = vmul.f32 0.125, %v259_v11 }
 0x217   :  { %v262_v13 = vadd.f32 1e-05, %v260_v12 }
 0x219   :  { %797 = vrsqrt.f32 %v262_v13 }
 0x223   :  { %v798_v15 = vpop.eup %797 }
 0x224   :  { %v264_v16 = vmul.f32 %v798_v15, %v261_v14 }
 0x226   :  { %v269_v17 = vrot.slane %v264_v16, %v970_v37 }
 0x228   :  { %v271_v19 = vmul.f32 %v269_v17, %v252_v4 }
 0x22a   :  { %v279_v20 = vadd.f32 %v668_v18, %v271_v19 }
 0x22c   :  { %v280_v21 = vmax.f32 %v279_v20, 0.0 }
 0x22e   :  { %v281_v22 = vpack.c.bf16 %v280_v21, %v280_v21 }
 0x230   :  { %751 = vmatmul.mubr.bf16.vlgmr.msra.gmra.mrb[4].mxu0 %v281_v22 }
 0x303   :  { %v387_v28 = vpop.f32.mrb[4].mxu0 }
 0x304   :  { %v388_v29 = vadd.f32 %v669_v27, %v387_v28  ;;  %v752_v30 = vpop.f32.mrb[5].mxu0  ;;  %v533_v27 = vld [vmem:[%s1104_s15] sm:$0x1]  ;;  %s829_s15 = smov [#allocation2]  }
 0x305   :  { %v390_v31 = vpop.f32.mrb[6].mxu0 }
 0x306   :  { %v393_v32 = vsel %vm122_vm3, %v388_v29, 0.0  ;;  %v753_v33 = vpop.f32.mrb[7].mxu0  ;;  %v685_v31 = vld [vmem:[%s1105_s16] ss:$0 sm:$0xff]  ;;  %s651_s16 = sshll.u32 %s829_s15, 4  ;;  %s652_s16 = int_to_ptr.vmem [resolvable:$true] %s651_s16 }
 0x307   :  { %v394_v35 = vrot.slane %v393_v32, 4  ;;  %p808_p1 = scmp.lt.s32.totalorder %s652_s16, %s652_s16 }
 0x309   :  { %v395_v36 = vadd.f32 %v394_v35, %v393_v32 }
 0x30b   :  { %v396_v38 = vrot.slane %v395_v36, 2 }
 0x30d   :  { %v397_v39 = vadd.f32 %v396_v38, %v395_v36  ;;  %v621_v38 = vand.u32 127, %v147_v34 }
 0x30f   :  { %v398_v40 = vrot.slane %v397_v39, 1  ;;  %vm622_vm5 = vcmp.lt.s32.totalorder %v621_v38, 4  ;;  %vm625_vm6 = vcmp.eq.s32.totalorder %v621_v38, 4 }
 0x311   :  { %v399_v41 = vadd.f32 %v398_v40, %v397_v39  ;;  %v686_v39 = vld [vmem:[%s1107_s18] ss:$0 sm:$0xff]  ;;  %s803_s18 = scalar_lea.vmem %s652_s16, 64 }
 0x312   :  { %p804_p0 = scmp.ne.s32.totalorder %s652_s16, %s803_s18  ;;  %p809_p2 = scmp.lt.s32.totalorder %s803_s18, %s803_s18 }
 0x313   :  { %v400_v42 = vmul.f32 0.125, %v399_v41 }
 0x314   :  { %p810_p3 = por %p809_p2, %p808_p1 }
 0x315   :  { %v401_v43 = vsub.f32 %v388_v29, %v400_v42 }
 0x316   :  { %p811_p4 = pnand %p810_p3, %p804_p0 }
 0x317   :  { %v402_v44 = vmul.f32 %v401_v43, %v401_v43 }
 0x319   :  { %v403_v45 = vsel %vm122_vm3, %v402_v44, 0.0 }
 0x31a   :  { %v404_v46 = vrot.slane %v403_v45, 4 }
 0x31c   :  { %v405_v47 = vadd.f32 %v404_v46, %v403_v45  ;;  %v691_v46 = vsel %vm625_vm6, 1.0, %v827_v2 }
 0x31e   :  { %v406_v48 = vrot.slane %v405_v47, 2 }
 0x320   :  { %v407_v49 = vadd.f32 %v406_v48, %v405_v47 }
 0x322   :  { %v408_v50 = vrot.slane %v407_v49, 1 }
 0x324   :  { %v409_v51 = vadd.f32 %v408_v50, %v407_v49 }
 0x326   :  { %v410_v52 = vmul.f32 0.125, %v409_v51 }
 0x328   :  { %v412_v53 = vadd.f32 1e-05, %v410_v52 }
 0x32a   :  { %799 = vrsqrt.f32 %v412_v53 }
 0x334   :  { %v800_v55 = vpop.eup %799 }
 0x335   :  { %v414_v56 = vmul.f32 %v800_v55, %v411_v54 }
 0x337   :  { %v419_v57 = vrot.slane %v414_v56, %v970_v37 }
 0x339   :  { %v421_v59 = vmul.f32 %v419_v57, %v401_v43 }
 0x33b   :  { %v429_v60 = vadd.f32 %v678_v58, %v421_v59 }
 0x33d   :  { %v430_v61 = vmax.f32 %v429_v60, 0.0 }
 0x33f   :  { %v431_v62 = vpack.c.bf16 %v430_v61, %v430_v61 }
 0x341   :  { %763 = vmatmul.mubr.msk.bf16.vlgmr.msra.gmra.mrb[4].mxu1 %vm122_vm3, %v431_v62 }
 0x342   :  { %770 = vmatprep.mubr.msk.bf16.mxu1 %vm828_vm1, %v827_v2  ;;  %767 = vmatpush3.bf16.msra.mxu1 %v793_v63 }
 0x343   :  { %768 = vmatprep.subr.bf16.mxu1 %v827_v2 }
 0x346   :  { %769 = vmatpush3.bf16.msra.mxu1 %v794_v0 }
 0x414   :  { %v508_v3 = vpop.f32.mrb[4].mxu1 }
 0x415   :  { %v509_v4 = vadd.f32 %v679_v1, %v508_v3  ;;  %v764_v5 = vpop.f32.mrb[5].mxu1 }
 0x416   :  { %v511_v6 = vpop.f32.mrb[6].mxu1 }
 0x417   :  { %v515_v7 = vsel %vm514_vm4, %v509_v4, 0.0  ;;  %v765_v8 = vpop.f32.mrb[7].mxu1 }
 0x418   :  { %v516_v9 = vrot.slane %v515_v7, 4 }
 0x41a   :  { %v517_v10 = vadd.f32 %v516_v9, %v515_v7 }
 0x41c   :  { %v518_v11 = vrot.slane %v517_v10, 2 }
 0x41e   :  { %v519_v12 = vadd.f32 %v518_v11, %v517_v10 }
 0x420   :  { %v520_v13 = vrot.slane %v519_v12, 1 }
 0x422   :  { %v521_v14 = vadd.f32 %v520_v13, %v519_v12 }
 0x424   :  { %v522_v15 = vmul.f32 0.125, %v521_v14 }
 0x426   :  { %v523_v16 = vsub.f32 %v509_v4, %v522_v15 }
 0x428   :  { %v524_v17 = vmul.f32 %v523_v16, %v523_v16 }
 0x42a   :  { %v525_v18 = vsel %vm514_vm4, %v524_v17, 0.0 }
 0x42b   :  { %v526_v19 = vrot.slane %v525_v18, 4 }
 0x42d   :  { %v527_v20 = vadd.f32 %v526_v19, %v525_v18 }
 0x42f   :  { %v528_v21 = vrot.slane %v527_v20, 2 }
 0x431   :  { %v529_v22 = vadd.f32 %v528_v21, %v527_v20 }
 0x433   :  { %v530_v23 = vrot.slane %v529_v22, 1 }
 0x435   :  { %v531_v24 = vadd.f32 %v530_v23, %v529_v22 }
 0x437   :  { %v532_v25 = vmul.f32 0.125, %v531_v24 }
 0x439   :  { %v534_v26 = vadd.f32 1e-05, %v532_v25 }
 0x43b   :  { %801 = vrsqrt.f32 %v534_v26 }
 0x445   :  { %v802_v28 = vpop.eup %801 }
 0x446   :  { %v536_v29 = vmul.f32 %v802_v28, %v533_v27 }
 0x448   :  { %v541_v30 = vrot.slane %v536_v29, %v970_v37  ;;  %v690_v37 = vsel %vm622_vm5, 1.0, %v827_v2 }
 0x44a   :  { %v543_v32 = vmul.f32 %v541_v30, %v523_v16 }
 0x44c   :  { %v551_v33 = vadd.f32 %v685_v31, %v543_v32 }
 0x44e   :  { %v552_v35 = vmax.f32 %v551_v33, 0.0 }
 0x450   :  { %v553_v36 = vpack.c.bf16 %v552_v35, %v552_v35 }
 0x452   :  { %771 = vmatmul.mubr.msk.bf16.vlgmr.msra.gmra.mrb[8].mxu1 %vm514_vm4, %v553_v36 }
 0x525   :  { %v614_v40 = vpop.f32.mrb[8].mxu1 }
 0x526   :  { %v615_v41 = vadd.f32 %v686_v39, %v614_v40  ;;  %v772_v42 = vpop.f32.mrb[9].mxu1 }
 0x527   :  { %v617_v43 = vpop.f32.mrb[10].mxu1 }
 0x528   :  { %v773_v44 = vpop.f32.mrb[11].mxu1  ;;  %v628_v45 = vmul.f32 %v690_v37, %v615_v41  ;;  %v638_v47 = vmul.f32 %v691_v46, %v615_v41 }
 0x52a   :  { %629 = vadd.xlane.f32.xlu0 %v628_v45 }
 0x52e   :  { %639 = vadd.xlane.f32.xlu0 %v638_v47 }
 0x5b7   :  { %v630_v34 = vpop.xlane.xlu0 %629 }
 0x5b8   :  { %v631_v48 = vrot.slane %v630_v34, 4 }
 0x5ba   :  { %v632_v49 = vadd.f32 %v631_v48, %v630_v34 }
 0x5bb   :  { %v640_v56 = vpop.xlane.xlu0 %639 }
 0x5bc   :  { %v633_v50 = vrot.slane %v632_v49, 2 }
 0x5be   :  { %v634_v51 = vadd.f32 %v633_v50, %v632_v49 }
 0x5c0   :  { %v635_v52 = vrot.slane %v634_v51, 1 }
 0x5c2   :  { %v636_v53 = vadd.f32 %v635_v52, %v634_v51 }
 0x5c4   :  { %v637_v54 = vmul.f32 0.03125, %v636_v53 }
 0x5c6   :  { %v641_v55 = vsub.f32 %v615_v41, %v637_v54 }
 0x5c8   :  { %v642_v57 = vadd.f32 %v641_v55, %v640_v56 }
 0x5ca   :  { %v643_v58 = vpack.c.bf16 %v642_v57, %v642_v57 }
 0x5cc   :  { %644 = vst [vmem:[#allocation2] sm:$0xf] %v643_v58 }
 0x5cd   :  { %814 = shalt.err (!%p811_p4)
}
 0x5ce   :  { %s815_s4 = scalar_lea.hbm %s1108_s19, 64 }
 0x5cf   :  { %p816_p5 = scmp.ne.s32.totalorder %s1108_s19, %s815_s4  ;;  %p819_p6 = scmp.lt.u32.totalorder %s815_s4, %s1108_s19 }
 0x5d1   :  { %p821_p7 = pnand %p819_p6, %p816_p5 }
 0x5d3   :  { %824 = shalt.err (!%p821_p7)
}
 0x5d4   :  { %654 = dma.vmem_to_hbm [thread:$0]  %s652_s16, 64, %s1108_s19, [#allocation3]  }
 0x5d5   :  { %825 = dma.done.wait [#allocation3], 64  }
 0x5d6   :  { %826 = vsyncadd [#allocation3], 4294967232 }
 0x5d7   :  { %658 = vsyncpa [#allocation3], 1 }

</bundles_post_ra>
